<compile_context>
chip_gen: v6e
topology: v6e:2x2x1
jax: 0.10.0
libtpu: 0.0.40
codegen_flags: <defaults>
</compile_context>

<pallas_src>
import math

import numpy as np
import jax
import jax.numpy as jnp
from jax import lax
from jax.experimental import pallas as pl
from jax.experimental.pallas import tpu as pltpu

# ---- module hyper-parameters (Synthetic2D.__init__ arguments) ----
IN_FEATURES = 2
DIFFUSION = 0.5
INTENSITY = 25.0          # jump intensity (Exponential rate for inter-jump times)
STEP_SIZE = 0.02
MU1 = (0.0, 0.0)
MU2 = (2.0, 2.0)
S = (1.0, 1.5)
INDEX = 1                 # only index == 1 drift is defined in the reference module
STEPS = 8

# Cap for the (probabilistically unbounded) torch while-loop.  Expected events
# ~= STEPS + intensity*horizon ~= 12; 64 gives negligible overflow probability.
# If the cap ever fires, the kernel reports it through the `truncated` output
# (== 1) instead of silently reusing random samples.
MAX_EVENTS = 64

ROWS = STEPS + 1          # path rows (leading, untiled dim of the VMEM outputs)
VSHAPE = (8, 128)         # one f32 vreg

S0, S1 = S
INV_S0 = 1.0 / S0
INV_S1 = 1.0 / S1
LOG_RATIO = math.log(S0 / S1)                 # folded at trace time
_FOLD_MEANS = (MU1[0] == MU1[1]) and (MU2[0] == MU2[1])


def _shift(xv, m):
    """Trace-time constant fold of (x - mean) when the mean is 0."""
    return xv if m == 0.0 else xv - m


def _drift_vec(x0v, x1v):
    """drift() of Synthetic2D (index == 1) evaluated on splatted (8,128) vregs."""
    if _FOLD_MEANS:
        # e = (x0-mu1)^2/S0^2 - (x1-mu2)^2/S1^2  (duplicated mean terms folded)
        a = _shift(x0v, MU1[0])
        b = _shift(x1v, MU2[0])
        e = a * a * (1.0 / (S0 * S0)) - b * b * (1.0 / (S1 * S1))
    else:
        e = (_shift(x0v, MU1[0]) ** 2 * (1.0 / (2 * S0 * S0))
             + _shift(x0v, MU1[1]) ** 2 * (1.0 / (2 * S0 * S0))
             - _shift(x1v, MU2[0]) ** 2 * (1.0 / (2 * S1 * S1))
             - _shift(x1v, MU2[1]) ** 2 * (1.0 / (2 * S1 * S1)))
    # p = 1/(1 + S0/S1*exp(e)) = sigmoid(-(e + ln(S0/S1)))
    #   = 0.5*(1 - tanh(0.5*(e + ln(S0/S1))))     -> single EUP tanh
    p = 0.5 * (1.0 - jnp.tanh(0.5 * (e + LOG_RATIO)))
    # NOTE: the torch module builds xp = (x[0], x[0]), so x0 (not x1) enters
    # BOTH components of the (xp - mu2) term.  This is deliberate, not a typo.
    d0 = -(INV_S0 * p * _shift(x0v, MU1[0]) + INV_S1 * (1.0 - p) * _shift(x0v, MU2[0]))
    d1 = -(INV_S0 * p * _shift(x1v, MU1[1]) + INV_S1 * (1.0 - p) * _shift(x0v, MU2[1]))
    return d0, d1


def _sde_kernel(z0_ref, normals_ref, exp_tb_ref, jumps_ref,
                path0_ref, path1_ref, flag_ref):
    # Splat the initial state into two vregs; record path row 0.
    x0v0 = jnp.full(VSHAPE, z0_ref[0], jnp.float32)
    x1v0 = jnp.full(VSHAPE, z0_ref[1], jnp.float32)
    path0_ref[0] = x0v0
    path1_ref[0] = x1v0

    def cond(carry):
        i, ni = carry[3], carry[5]
        return jnp.logical_and(i <= STEPS, ni < MAX_EVENTS)

    def body(carry):
        ta, tb, tg, i, ji, ni, x0v, x1v = carry
        is_jump = tb < tg
        # TODO(synk): the probability-zero `tb == i*step_size` branch of the
        # torch loop (jump + record in the same event) is folded into the grid
        # branch, identically to the numpy reference below.
        dt = jnp.where(is_jump, tb - ta, tg - ta)

        # Scalar-domain fetches of the pre-sampled randoms (SMEM reads);
        # indices are in-bounds by construction (cond guarantees ni < MAX_EVENTS
        # and ji <= ni), so no clamps / silent sample reuse.
        n0 = normals_ref[2 * ni]
        n1 = normals_ref[2 * ni + 1]
        j0 = jnp.where(is_jump, jumps_ref[2 * ji], 0.0)
        j1 = jnp.where(is_jump, jumps_ref[2 * ji + 1], 0.0)

        # Vector-domain Euler-Maruyama + jump update; state stays in vregs.
        d0v, d1v = _drift_vec(x0v, x1v)
        dtv = jnp.full(VSHAPE, dt, jnp.float32)
        sqv = jnp.sqrt(dtv) * jnp.float32(DIFFUSION)      # EUP sqrt, VPU scale
        nx0v = (x0v + d0v * dtv
                + sqv * jnp.full(VSHAPE, n0, jnp.float32)
                + jnp.full(VSHAPE, j0, jnp.float32))
        nx1v = (x1v + d1v * dtv
                + sqv * jnp.full(VSHAPE, n1, jnp.float32)
                + jnp.full(VSHAPE, j1, jnp.float32))

        # Record path row i with a plain vector store (leading-dim dynamic
        # index, no vector->scalar crossing).  The write is unconditional: on a
        # jump event the row is overwritten later by the grid event at the same
        # i (i only advances on grid events), so the final contents match the
        # torch semantics.  If the event cap truncates after a jump event, the
        # row holds a jump-intermediate state — acceptable because `truncated`
        # is reported and must be checked downstream.
        path0_ref[i] = nx0v
        path1_ref[i] = nx1v

        # Scalar time / index bookkeeping.
        new_ta = jnp.where(is_jump, tb, tg)
        new_tb = jnp.where(is_jump, tb + exp_tb_ref[ji + 1], tb)
        new_tg = jnp.where(is_jump, tg, tg + jnp.float32(STEP_SIZE))
        new_i = jnp.where(is_jump, i, i + 1)
        new_ji = jnp.where(is_jump, ji + 1, ji)
        return (new_ta, new_tb, new_tg, new_i, new_ji, ni + 1, nx0v, nx1v)

    carry0 = (jnp.float32(0.0),            # ta
              exp_tb_ref[0],               # tb  (first Exp(intensity) sample)
              jnp.float32(STEP_SIZE),      # tg = i * step_size
              jnp.int32(1),                # i
              jnp.int32(0),                # ji  (jump counter)
              jnp.int32(0),                # ni  (event / normal counter)
              x0v0, x1v0)                  # loop-carried state vregs

    final = lax.while_loop(cond, body, carry0)
    # truncated == 1 iff the safety event cap fired before the path finished.
    flag_ref[0] = (final[3] <= STEPS).astype(jnp.int32)


@jax.jit
def synthetic2d_forward(z0, normals, exp_tb, jumps):
    """Pallas implementation of Synthetic2D.forward(z0, steps=STEPS)."""
    path0, path1, truncated = pl.pallas_call(
        _sde_kernel,
        out_shape=(jax.ShapeDtypeStruct((ROWS, 8, 128), jnp.float32),
                   jax.ShapeDtypeStruct((ROWS, 8, 128), jnp.float32),
                   jax.ShapeDtypeStruct((1,), jnp.int32)),
        in_specs=[pl.BlockSpec(memory_space=pltpu.MemorySpace.SMEM)] * 4,
        out_specs=(pl.BlockSpec(memory_space=pltpu.MemorySpace.VMEM),
                   pl.BlockSpec(memory_space=pltpu.MemorySpace.VMEM),
                   pl.BlockSpec(memory_space=pltpu.MemorySpace.SMEM)),
    )(z0, normals, exp_tb, jumps)
    # Each path row was stored as a splatted vreg; pick one element per row.
    path = jnp.stack([path0[:, 0, 0], path1[:, 0, 0]], axis=-1)
    return path, truncated


# ---------------- pure-python reference (same pre-sampled randoms) ----------------
def _drift_np(x):
    e = ((x[0] - MU1[0]) ** 2 / (2 * S0 * S0) + (x[0] - MU1[1]) ** 2 / (2 * S0 * S0)
         - (x[1] - MU2[0]) ** 2 / (2 * S1 * S1) - (x[1] - MU2[1]) ** 2 / (2 * S1 * S1))
    p = 1.0 / (1.0 + (S0 / S1) * math.exp(e))
    xp = np.array([x[0], x[0]], dtype=np.float64)
    mu1 = np.array(MU1, dtype=np.float64)
    mu2 = np.array(MU2, dtype=np.float64)
    return -((1.0 / S0) * p * (x - mu1) + (1.0 / S1) * (1.0 - p) * (xp - mu2))


def reference_path(z0, normals, exp_tb, jumps):
    z0 = np.asarray(z0, np.float64)
    normals = np.asarray(normals, np.float64)
    exp_tb = np.asarray(exp_tb, np.float64)
    jumps = np.asarray(jumps, np.float64)
    path = np.zeros((STEPS + 1, IN_FEATURES), np.float64)
    x = z0.copy()
    path[0] = x
    ta, tb, tg = 0.0, float(exp_tb[0]), STEP_SIZE
    i, ji, ni = 1, 0, 0
    while i <= STEPS and ni < MAX_EVENTS:
        is_jump = tb < tg
        dt = (tb - ta) if is_jump else (tg - ta)
        d = _drift_np(x)
        n = normals[2 * ni:2 * ni + 2]
        nx = x + d * dt + math.sqrt(dt) * DIFFUSION * n
        if is_jump:
            nx = nx + jumps[2 * ji:2 * ji + 2]
            ta = tb
            tb = tb + float(exp_tb[ji + 1])
            ji += 1
        else:
            path[i] = nx
            ta = tg
            tg = tg + STEP_SIZE
            i += 1
        x = nx
        ni += 1
    return path


if __name__ == "__main__":
    key = jax.random.PRNGKey(0)
    k1, k2, k3 = jax.random.split(key, 3)

    z0 = jnp.array([0.1, -0.2], dtype=jnp.float32)
    # one Normal(0,1) pair per event (both branches draw one)
    normals = jax.random.normal(k1, (2 * MAX_EVENTS,), dtype=jnp.float32)
    # inter-jump times ~ Exponential(rate = intensity)
    exp_tb = (jax.random.exponential(k2, (MAX_EVENTS + 1,)) / INTENSITY).astype(jnp.float32)
    # jump sizes ~ Exponential(rate = [10, 1]) per jump
    jump_rates = jnp.array([10.0, 1.0], dtype=jnp.float32)
    jumps = (jax.random.exponential(k3, (MAX_EVENTS, 2)) / jump_rates).astype(
        jnp.float32).reshape(-1)

    path, truncated = synthetic2d_forward(z0, normals, exp_tb, jumps)
    path = jax.block_until_ready(path)

    assert int(truncated[0]) == 0, "event cap hit (statistically impossible at this intensity)"
    ref = reference_path(z0, normals, exp_tb, jumps)
    np.testing.assert_allclose(np.asarray(path), ref, rtol=1e-3, atol=1e-3)

    print("KERNEL_OK")
</pallas_src>

<mosaic_0001>
module attributes {stable_mosaic.version = 11 : i64} {
  func.func @_sde_kernel(%arg0: memref<2xf32, #tpu.memory_space<smem>>, %arg1: memref<128xf32, #tpu.memory_space<smem>>, %arg2: memref<65xf32, #tpu.memory_space<smem>>, %arg3: memref<128xf32, #tpu.memory_space<smem>>, %arg4: memref<9x8x128xf32, #tpu.memory_space<vmem>>, %arg5: memref<9x8x128xf32, #tpu.memory_space<vmem>>, %arg6: memref<1xi32, #tpu.memory_space<smem>>) attributes {dimension_semantics = [], scalar_prefetch = 0 : i64, scratch_operands = 0 : i64, tpu.core_type = #tpu.core_type<tc>} {
    %c0 = arith.constant 0 : index
    %0 = memref.load %arg0[%c0] : memref<2xf32, #tpu.memory_space<smem>>
    %1 = vector.broadcast %0 : f32 to vector<8x128xf32>
    %c1 = arith.constant 1 : index
    %2 = memref.load %arg0[%c1] : memref<2xf32, #tpu.memory_space<smem>>
    %3 = vector.broadcast %2 : f32 to vector<8x128xf32>
    %c0_0 = arith.constant 0 : index
    %c0_1 = arith.constant 0 : index
    %c0_2 = arith.constant 0 : index
    %4 = vector.load %arg4[%c0_0, %c0_1, %c0_2] : memref<9x8x128xf32, #tpu.memory_space<vmem>>, vector<1x8x128xf32>
    %5 = vector.shape_cast %4 : vector<1x8x128xf32> to vector<8x128xf32>
    %6 = vector.shape_cast %1 : vector<8x128xf32> to vector<1x8x128xf32>
    tpu.vector_store %arg4[%c0_0, %c0_1, %c0_2], %6 {strides = array<i32>} : memref<9x8x128xf32, #tpu.memory_space<vmem>>, vector<1x8x128xf32>,
    %c0_3 = arith.constant 0 : index
    %c0_4 = arith.constant 0 : index
    %c0_5 = arith.constant 0 : index
    %7 = vector.load %arg5[%c0_3, %c0_4, %c0_5] : memref<9x8x128xf32, #tpu.memory_space<vmem>>, vector<1x8x128xf32>
    %8 = vector.shape_cast %7 : vector<1x8x128xf32> to vector<8x128xf32>
    %9 = vector.shape_cast %3 : vector<8x128xf32> to vector<1x8x128xf32>
    tpu.vector_store %arg5[%c0_3, %c0_4, %c0_5], %9 {strides = array<i32>} : memref<9x8x128xf32, #tpu.memory_space<vmem>>, vector<1x8x128xf32>,
    %c0_6 = arith.constant 0 : index
    %10 = memref.load %arg2[%c0_6] : memref<65xf32, #tpu.memory_space<smem>>
    %cst = arith.constant 0.000000e+00 : f32
    %cst_7 = arith.constant 2.000000e-02 : f32
    %c1_i32 = arith.constant 1 : i32
    %c0_i32 = arith.constant 0 : i32
    %c0_i32_8 = arith.constant 0 : i32
    %11:8 = scf.while (%arg7 = %cst, %arg8 = %10, %arg9 = %cst_7, %arg10 = %c1_i32, %arg11 = %c0_i32, %arg12 = %c0_i32_8, %arg13 = %1, %arg14 = %3) : (f32, f32, f32, i32, i32, i32, vector<8x128xf32>, vector<8x128xf32>) -> (f32, f32, f32, i32, i32, i32, vector<8x128xf32>, vector<8x128xf32>) {
      %c8_i32_10 = arith.constant 8 : i32
      %15 = arith.cmpi sle, %arg10, %c8_i32_10 : i32
      %c64_i32 = arith.constant 64 : i32
      %16 = arith.cmpi slt, %arg12, %c64_i32 : i32
      %17 = arith.andi %15, %16 : i1
      scf.condition(%17) %arg7, %arg8, %arg9, %arg10, %arg11, %arg12, %arg13, %arg14 : f32, f32, f32, i32, i32, i32, vector<8x128xf32>, vector<8x128xf32>
    } do {
    ^bb0(%arg7: f32, %arg8: f32, %arg9: f32, %arg10: i32, %arg11: i32, %arg12: i32, %arg13: vector<8x128xf32>, %arg14: vector<8x128xf32>):
      %15 = arith.cmpf olt, %arg8, %arg9 : f32
      %16 = arith.subf %arg8, %arg7 : f32
      %17 = arith.subf %arg9, %arg7 : f32
      %18 = arith.select %15, %16, %17 : f32
      %c2_i32 = arith.constant 2 : i32
      %19 = arith.muli %c2_i32, %arg12 : i32
      %20 = arith.index_cast %19 : i32 to index
      %21 = memref.load %arg1[%20] : memref<128xf32, #tpu.memory_space<smem>>
      %c2_i32_10 = arith.constant 2 : i32
      %22 = arith.muli %c2_i32_10, %arg12 : i32
      %c1_i32_11 = arith.constant 1 : i32
      %23 = arith.addi %22, %c1_i32_11 : i32
      %24 = arith.index_cast %23 : i32 to index
      %25 = memref.load %arg1[%24] : memref<128xf32, #tpu.memory_space<smem>>
      %c2_i32_12 = arith.constant 2 : i32
      %26 = arith.muli %c2_i32_12, %arg11 : i32
      %27 = arith.index_cast %26 : i32 to index
      %28 = memref.load %arg3[%27] : memref<128xf32, #tpu.memory_space<smem>>
      %cst_13 = arith.constant 0.000000e+00 : f32
      %29 = arith.select %15, %28, %cst_13 : f32
      %c2_i32_14 = arith.constant 2 : i32
      %30 = arith.muli %c2_i32_14, %arg11 : i32
      %c1_i32_15 = arith.constant 1 : i32
      %31 = arith.addi %30, %c1_i32_15 : i32
      %32 = arith.index_cast %31 : i32 to index
      %33 = memref.load %arg3[%32] : memref<128xf32, #tpu.memory_space<smem>>
      %cst_16 = arith.constant 0.000000e+00 : f32
      %34 = arith.select %15, %33, %cst_16 : f32
      %cst_17 = arith.constant 2.000000e+00 : f32
      %35 = vector.broadcast %cst_17 : f32 to vector<8x128xf32>
      %36 = arith.subf %arg14, %35 : vector<8x128xf32>
      %37 = arith.mulf %arg13, %arg13 : vector<8x128xf32>
      %cst_18 = arith.constant 1.000000e+00 : f32
      %38 = vector.broadcast %cst_18 : f32 to vector<8x128xf32>
      %39 = arith.mulf %37, %38 : vector<8x128xf32>
      %40 = arith.mulf %36, %36 : vector<8x128xf32>
      %cst_19 = arith.constant 0.444444448 : f32
      %41 = vector.broadcast %cst_19 : f32 to vector<8x128xf32>
      %42 = arith.mulf %40, %41 : vector<8x128xf32>
      %43 = arith.subf %39, %42 : vector<8x128xf32>
      %cst_20 = arith.constant -0.405465096 : f32
      %44 = vector.broadcast %cst_20 : f32 to vector<8x128xf32>
      %45 = arith.addf %43, %44 : vector<8x128xf32>
      %cst_21 = arith.constant 5.000000e-01 : f32
      %46 = vector.broadcast %cst_21 : f32 to vector<8x128xf32>
      %47 = arith.mulf %46, %45 : vector<8x128xf32>
      %48 = math.tanh %47 : vector<8x128xf32>
      %cst_22 = arith.constant 1.000000e+00 : f32
      %49 = vector.broadcast %cst_22 : f32 to vector<8x128xf32>
      %50 = arith.subf %49, %48 : vector<8x128xf32>
      %cst_23 = arith.constant 5.000000e-01 : f32
      %51 = vector.broadcast %cst_23 : f32 to vector<8x128xf32>
      %52 = arith.mulf %51, %50 : vector<8x128xf32>
      %cst_24 = arith.constant 1.000000e+00 : f32
      %53 = vector.broadcast %cst_24 : f32 to vector<8x128xf32>
      %54 = arith.mulf %53, %52 : vector<8x128xf32>
      %55 = arith.mulf %54, %arg13 : vector<8x128xf32>
      %cst_25 = arith.constant 1.000000e+00 : f32
      %56 = vector.broadcast %cst_25 : f32 to vector<8x128xf32>
      %57 = arith.subf %56, %52 : vector<8x128xf32>
      %cst_26 = arith.constant 0.666666686 : f32
      %58 = vector.broadcast %cst_26 : f32 to vector<8x128xf32>
      %59 = arith.mulf %58, %57 : vector<8x128xf32>
      %cst_27 = arith.constant 2.000000e+00 : f32
      %60 = vector.broadcast %cst_27 : f32 to vector<8x128xf32>
      %61 = arith.subf %arg13, %60 : vector<8x128xf32>
      %62 = arith.mulf %59, %61 : vector<8x128xf32>
      %63 = arith.addf %55, %62 : vector<8x128xf32>
      %cst_28 = arith.constant 0.000000e+00 : f32
      %64 = vector.broadcast %cst_28 : f32 to vector<8x128xf32>
      %65 = arith.subf %64, %63 : vector<8x128xf32>
      %cst_29 = arith.constant 1.000000e+00 : f32
      %66 = vector.broadcast %cst_29 : f32 to vector<8x128xf32>
      %67 = arith.mulf %66, %52 : vector<8x128xf32>
      %68 = arith.mulf %67, %arg14 : vector<8x128xf32>
      %cst_30 = arith.constant 1.000000e+00 : f32
      %69 = vector.broadcast %cst_30 : f32 to vector<8x128xf32>
      %70 = arith.subf %69, %52 : vector<8x128xf32>
      %cst_31 = arith.constant 0.666666686 : f32
      %71 = vector.broadcast %cst_31 : f32 to vector<8x128xf32>
      %72 = arith.mulf %71, %70 : vector<8x128xf32>
      %cst_32 = arith.constant 2.000000e+00 : f32
      %73 = vector.broadcast %cst_32 : f32 to vector<8x128xf32>
      %74 = arith.subf %arg13, %73 : vector<8x128xf32>
      %75 = arith.mulf %72, %74 : vector<8x128xf32>
      %76 = arith.addf %68, %75 : vector<8x128xf32>
      %cst_33 = arith.constant 0.000000e+00 : f32
      %77 = vector.broadcast %cst_33 : f32 to vector<8x128xf32>
      %78 = arith.subf %77, %76 : vector<8x128xf32>
      %79 = vector.broadcast %18 : f32 to vector<8x128xf32>
      %80 = math.sqrt %79 : vector<8x128xf32>
      %cst_34 = arith.constant 5.000000e-01 : f32
      %81 = vector.broadcast %cst_34 : f32 to vector<8x128xf32>
      %82 = arith.mulf %80, %81 : vector<8x128xf32>
      %83 = arith.mulf %65, %79 : vector<8x128xf32>
      %84 = arith.addf %arg13, %83 : vector<8x128xf32>
      %85 = vector.broadcast %21 : f32 to vector<8x128xf32>
      %86 = arith.mulf %82, %85 : vector<8x128xf32>
      %87 = arith.addf %84, %86 : vector<8x128xf32>
      %88 = vector.broadcast %29 : f32 to vector<8x128xf32>
      %89 = arith.addf %87, %88 : vector<8x128xf32>
      %90 = arith.mulf %78, %79 : vector<8x128xf32>
      %91 = arith.addf %arg14, %90 : vector<8x128xf32>
      %92 = vector.broadcast %25 : f32 to vector<8x128xf32>
      %93 = arith.mulf %82, %92 : vector<8x128xf32>
      %94 = arith.addf %91, %93 : vector<8x128xf32>
      %95 = vector.broadcast %34 : f32 to vector<8x128xf32>
      %96 = arith.addf %94, %95 : vector<8x128xf32>
      %97 = arith.index_cast %arg10 : i32 to index
      %c0_35 = arith.constant 0 : index
      %c0_36 = arith.constant 0 : index
      %98 = vector.load %arg4[%97, %c0_35, %c0_36] : memref<9x8x128xf32, #tpu.memory_space<vmem>>, vector<1x8x128xf32>
      %99 = vector.shape_cast %98 : vector<1x8x128xf32> to vector<8x128xf32>
      %100 = vector.shape_cast %89 : vector<8x128xf32> to vector<1x8x128xf32>
      tpu.vector_store %arg4[%97, %c0_35, %c0_36], %100 {strides = array<i32>} : memref<9x8x128xf32, #tpu.memory_space<vmem>>, vector<1x8x128xf32>,
      %101 = arith.index_cast %arg10 : i32 to index
      %c0_37 = arith.constant 0 : index
      %c0_38 = arith.constant 0 : index
      %102 = vector.load %arg5[%101, %c0_37, %c0_38] : memref<9x8x128xf32, #tpu.memory_space<vmem>>, vector<1x8x128xf32>
      %103 = vector.shape_cast %102 : vector<1x8x128xf32> to vector<8x128xf32>
      %104 = vector.shape_cast %96 : vector<8x128xf32> to vector<1x8x128xf32>
      tpu.vector_store %arg5[%101, %c0_37, %c0_38], %104 {strides = array<i32>} : memref<9x8x128xf32, #tpu.memory_space<vmem>>, vector<1x8x128xf32>,
      %105 = arith.select %15, %arg8, %arg9 : f32
      %c1_i32_39 = arith.constant 1 : i32
      %106 = arith.addi %arg11, %c1_i32_39 : i32
      %107 = arith.index_cast %106 : i32 to index
      %108 = memref.load %arg2[%107] : memref<65xf32, #tpu.memory_space<smem>>
      %109 = arith.addf %arg8, %108 : f32
      %110 = arith.select %15, %109, %arg8 : f32
      %cst_40 = arith.constant 2.000000e-02 : f32
      %111 = arith.addf %arg9, %cst_40 : f32
      %112 = arith.select %15, %arg9, %111 : f32
      %c1_i32_41 = arith.constant 1 : i32
      %113 = arith.addi %arg10, %c1_i32_41 : i32
      %114 = arith.select %15, %arg10, %113 : i32
      %c1_i32_42 = arith.constant 1 : i32
      %115 = arith.addi %arg11, %c1_i32_42 : i32
      %116 = arith.select %15, %115, %arg11 : i32
      %c1_i32_43 = arith.constant 1 : i32
      %117 = arith.addi %arg12, %c1_i32_43 : i32
      scf.yield %105, %110, %112, %114, %116, %117, %89, %96 : f32, f32, f32, i32, i32, i32, vector<8x128xf32>, vector<8x128xf32>
    }
    %c8_i32 = arith.constant 8 : i32
    %12 = arith.cmpi sle, %11#3, %c8_i32 : i32
    %13 = arith.extui %12 : i1 to i32
    %c0_9 = arith.constant 0 : index
    %14 = memref.load %arg6[%c0_9] : memref<1xi32, #tpu.memory_space<smem>>
    memref.store %13, %arg6[%c0_9] : memref<1xi32, #tpu.memory_space<smem>>
    return
  }
}

</mosaic_0001>

<bundles_post_ra>
// kernel: synthetic2d_forward.1
= control target key start
LH: loop header
LB: loop body
LE: loop exit
PB: predicated region body
PF: predicated region fallthrough
CT: control target
= control target key end

     0   :  { %12 = vsyncpa [#allocation3], 0  ;;  %s614_s0 = inlined_call_operand.hbm [shape: f32[2], index: 0, kind: input, shape index: {}]   ;;  %s615_s1 = inlined_call_operand.vmem [shape: f32[128], index: 1, kind: input, shape index: {}]   ;;  %s616_s2 = inlined_call_operand.vmem [shape: f32[65], index: 2, kind: input, shape index: {}]   ;;  %s617_s3 = inlined_call_operand.vmem [shape: f32[128], index: 3, kind: input, shape index: {}]   ;;  %s618_s4 = inlined_call_operand.vmem [shape: f32[9,8,128], index: 4, kind: output, shape index: {0}]   ;;  %s619_s5 = inlined_call_operand.vmem [shape: f32[9,8,128], index: 5, kind: output, shape index: {1}]   ;;  %s620_s6 = inlined_call_operand.hbm [shape: s32[1], index: 6, kind: output, shape index: {2}]  }
   0x1   :  { %13 = vsyncpa [#allocation5], 0 }
   0x2   :  { %14 = vsyncpa [#allocation8], 0  ;;  %s40_s23 = sshll.u32 %s616_s2, 4  ;;  %s41_s23 = int_to_ptr.vmem [resolvable:$true] %s40_s23 }
   0x3   :  { %15 = vsyncpa [#allocation4], 0  ;;  %s301_s24 = scalar_lea.vmem %s41_s23, 16  ;;  %p306_p1 = scmp.lt.s32.totalorder %s41_s23, %s41_s23 }
   0x4   :  { %p302_p0 = scmp.ne.s32.totalorder %s41_s23, %s301_s24  ;;  %p307_p2 = scmp.lt.s32.totalorder %s301_s24, %s301_s24 }
   0x6   :  { %p308_p3 = por %p307_p2, %p306_p1 }
   0x8   :  { %p309_p4 = pnand %p308_p3, %p302_p0 }
   0xa   :  { %312 = shalt.err (!%p309_p4)
}
   0xb   :  { %s425_s25 = smov [#allocation7]   ;;  %s426_s26 = smov [#allocation2]  }
   0xc   :  { %43 = dma.vmem_to_smem %s41_s23, 16, %s425_s25, [#allocation8]  }
   0xd   :  { %23 = dma.hbm_to_smem %s614_s0, 16, %s426_s26, [#allocation3]  }
   0xe   :  { %s30_s2 = sshll.u32 %s615_s1, 4  ;;  %s50_s9 = sshll.u32 %s617_s3, 4  ;;  %s31_s2 = int_to_ptr.vmem [resolvable:$true] %s30_s2  ;;  %s51_s9 = int_to_ptr.vmem [resolvable:$true] %s50_s9 }
   0xf   :  { %s321_s10 = scalar_lea.vmem %s31_s2, 16  ;;  %p326_p6 = scmp.lt.s32.totalorder %s31_s2, %s31_s2 }
  0x10   :  { %p322_p5 = scmp.ne.s32.totalorder %s31_s2, %s321_s10  ;;  %p327_p7 = scmp.lt.s32.totalorder %s321_s10, %s321_s10 }
  0x12   :  { %p328_p8 = por %p327_p7, %p326_p6 }
  0x14   :  { %p329_p9 = pnand %p328_p8, %p322_p5 }
  0x16   :  { %332 = shalt.err (!%p329_p9)
}
  0x17   :  { %s427_s11 = smov [#allocation6]   ;;  %s333_s0 = scalar_lea.vmem %s51_s9, 16 }
  0x18   :  { %33 = dma.vmem_to_smem %s31_s2, 16, %s427_s11, [#allocation5]  }
  0x19   :  { %p334_p10 = scmp.ne.s32.totalorder %s51_s9, %s333_s0  ;;  %p338_p11 = scmp.lt.s32.totalorder %s51_s9, %s51_s9 }
  0x1a   :  { %p339_p12 = scmp.lt.s32.totalorder %s333_s0, %s333_s0 }
  0x1c   :  { %p340_p13 = por %p339_p12, %p338_p11 }
  0x1e   :  { %p341_p0 = pnand %p340_p13, %p334_p10 }
  0x20   :  { %344 = shalt.err (!%p341_p0)
}
  0x21   :  { %s428_s1 = smov [#allocation9]  }
  0x22   :  { %53 = dma.vmem_to_smem %s51_s9, 16, %s428_s1, [#allocation8]  }
  0x23   :  { %385 = dma.done.wait [#allocation3], 16  }
  0x24   :  { %386 = vsyncadd [#allocation3], 4294967280 }
  0x25   :  { %387 = dma.done.wait [#allocation5], 16  }
  0x26   :  { %388 = vsyncadd [#allocation5], 4294967280 }
  0x27   :  { %389 = dma.done.wait [#allocation8], 32  }
  0x28   :  { %390 = vsyncadd [#allocation8], 4294967264 }
  0x29   :  { %66 = sfence }
  0x2a   :  { %s67_s3 = sld [smem:[#allocation2]]  ;;  %s487_s18 = smov 0  }
  0x2b   :  { %s222_s12 = sld [smem:[#allocation2 + $0x1]]  ;;  %s489_s19 = smov 0  }
  0x2c   :  { %s73_s13 = sld [smem:[#allocation7]]   ;;  %s491_s20 = smov 1  }
  0x2d   :  { %s493_s21 = smov 0.02   ;;  %s497_s22 = smov 0.0  }
  0x30   :  { %v68_v0 = vstv %s67_s3  }
  0x31   :  { %71 = vst [vmem:[%s618_s4] sm:$0xff] %v68_v0  ;;  %v70_v1 = vstv %s222_s12  }
  0x32   :  { %72 = vst [vmem:[%s619_s5] sm:$0xff] %v70_v1 }
  0x33 LB: > { %v225_v2 = vadd.f32 -2.0, %v395_v1  ;;  %v104_v3 = vmul.f32 %v399_v0, %v399_v0  ;;  %p526_p1 = scmp.lt.f32.partialorder %s419_s13, %s415_s21  ;;  %s90_s24 = ssub.f32 %s419_s13, %s423_s22  ;;  %v226_v17 = vadd.f32 -2.0, %v399_v0  ;;  %s423_s22 = sphi %s497_s22, %s629_s22   ;;  %s419_s13 = sphi %s73_s13, %s628_s13   ;;  %s415_s21 = sphi %s493_s21, %s627_s21   ;;  %s411_s20 = sphi %s491_s20, %s626_s20   ;;  %s407_s19 = sphi %s489_s19, %s625_s19   ;;  %s403_s18 = sphi %s487_s18, %s624_s18   ;;  %v399_v0 = vphi %v68_v0, %v138_v0   ;;  %v395_v1 = vphi %v70_v1, %v145_v1  }
  0x34   : > { %s91_s25 = ssub.f32 %s415_s21, %s423_s22  ;;  %s152_s26 = sadd.s32 1, %s407_s19 }
  0x35   : > { %v105_v4 = vmul.f32 %v225_v2, %v225_v2  ;;  %s151_s27 = scalar_select %p526_p1, %s419_s13, %s415_s21  }
  0x36   : > { %s631_s24 = smov (!%p526_p1, %s90_s24), %s91_s25  ;;  %s153_s28 = sld [smem:[#allocation7 + %s152_s26]] }
  0x37   : > { %v106_v5 = vmul.f32 0.44444445, %v105_v4  ;;  %v123_v8 = vstv %s631_s24  ;;  %s158_s29 = sadd.s32 1, %s411_s20  ;;  %s156_s30 = sadd.f32 0.02, %s415_s21 }
  0x38   : > { %297 = vrsqrt.f32 %v123_v8  ;;  %s161_s2 = sadd.s32 1, %s403_s18   ;;  %s633_s26 = smov (!%p526_p1, %s152_s26), %s407_s19  ;;  %vm126_vm0 = vcmp.eq.f32.partialorder %v123_v8, inf  ;;  %v129_v15 = vand.u32 2147483648, %v123_v8  ;;  %vm128_vm1 = vcmp.eq.f32.partialorder %v123_v8, 0.0 }
  0x39   : > { %v107_v6 = vsub.f32 %v104_v3, %v106_v5  ;;  %s545_s7 = scalar_select %p526_p1, %s411_s20, %s158_s29  }
  0x3a   : > { %s550_s8 = scalar_select %p526_p1, %s415_s21, %s156_s30  }
  0x3b   : > { %v108_v7 = vadd.f32 -0.4054651, %v107_v6  ;;  %s223_s10 = sshll.u32 %s403_s18, 1  ;;  %s224_s11 = sshll.u32 %s407_s19, 1 }
  0x3c   : > { %s154_s9 = sadd.f32 %s419_s13, %s153_s28  ;;  %s95_s0 = sadd.s32 1, %s223_s10 }
  0x3d   : > { %v109_v9 = vmul.f32 0.5, %v108_v7  ;;  %s94_s1 = sld [smem:[#allocation6 + %s223_s10]]  ;;  %s100_s3 = sadd.s32 1, %s224_s11 }
  0x3e   : > { %s635_s9 = smov (!%p526_p1, %s154_s9), %s419_s13  ;;  %s96_s12 = sld [smem:[#allocation6 + %s95_s0]] }
  0x3f   : > { %299 = vtanh.f32 %v109_v9  ;;  %s98_s14 = sld [smem:[#allocation9 + %s224_s11]]  ;;  %s227_s16 = sshll.u32 %s411_s20, 3 }
  0x40   : > { %s101_s15 = sld [smem:[#allocation9 + %s100_s3]]  ;;  %s147_s22 = scalar_lea.vmem %s618_s4, %s227_s16 }
  0x41   : > { %s149_s28 = scalar_lea.vmem %s619_s5, %s227_s16  ;;  %p83_p2 = scmp.le.s32.totalorder %s545_s7, 8 }
  0x42   : > { %p84_p3 = scmp.lt.s32.totalorder %s161_s2, 64  ;;  %s624_s18 = smov %s161_s2 }
  0x43   : > { %v134_v27 = vstv %s94_s1  ;;  %s625_s19 = smov %s633_s26  ;;  %s626_s20 = smov %s545_s7 }
  0x44   : > { %v141_v28 = vstv %s96_s12  ;;  %p85_p4 = pnand %p84_p3, %p83_p2  ;;  %s627_s21 = smov %s550_s8 }
  0x45   : > { %v298_v10 = vpop.eup %297  ;;  %s637_s14 = smov (!%p526_p1, %s98_s14), 0.0  ;;  %s628_s13 = smov %s635_s9 }
  0x46   : > { %v125_v13 = vmul.f32 %v298_v10, %v123_v8  ;;  %s639_s15 = smov (!%p526_p1, %s101_s15), 0.0  ;;  %v137_v37 = vstv %s637_s14  ;;  %s429_s11 = smov (%p85_p4), [#allocation10]  }
  0x47   : > { %v144_v38 = vstv %s639_s15 }
  0x48   : > { %v127_v18 = vsel %vm126_vm0, %v123_v8, %v125_v13 }
  0x49   : > { %v130_v22 = vsel %vm128_vm1, %v129_v15, %v127_v18 }
  0x4a   : > { %v131_v25 = vmul.f32 0.5, %v130_v22 }
  0x4c   : > { %v300_v11 = vpop.eup %299  ;;  %v135_v32 = vmul.f32 %v134_v27, %v131_v25  ;;  %v142_v34 = vmul.f32 %v141_v28, %v131_v25 }
  0x4d   : > { %v111_v12 = vsub.f32 1.0, %v300_v11 }
  0x4f   : > { %v112_v14 = vmul.f32 0.5, %v111_v12 }
  0x51   : > { %v114_v16 = vsub.f32 1.0, %v112_v14  ;;  %v113_v19 = vmul.f32 %v399_v0, %v112_v14  ;;  %v120_v21 = vmul.f32 %v395_v1, %v112_v14 }
  0x53   : > { %v115_v20 = vmul.f32 0.6666667, %v114_v16 }
  0x55   : > { %v117_v23 = vmul.f32 %v226_v17, %v115_v20 }
  0x57   : > { %v118_v24 = vadd.f32 %v117_v23, %v113_v19  ;;  %v121_v26 = vadd.f32 %v120_v21, %v117_v23 }
  0x59   : > { %v119_v29 = vsub.f32 0.0, %v118_v24  ;;  %v122_v30 = vsub.f32 0.0, %v121_v26 }
  0x5b   : > { %v132_v31 = vmul.f32 %v123_v8, %v119_v29  ;;  %v139_v33 = vmul.f32 %v123_v8, %v122_v30 }
  0x5d   : > { %v133_v35 = vadd.f32 %v399_v0, %v132_v31  ;;  %v140_v36 = vadd.f32 %v395_v1, %v139_v33 }
  0x5f   : > { %v136_v39 = vadd.f32 %v135_v32, %v133_v35  ;;  %v143_v40 = vadd.f32 %v142_v34, %v140_v36  ;;  %88 = sbr.rel (!%p85_p4) target bundleno = 51 (0x33), region = 78 }
  0x61   : > { %v138_v0 = vadd.f32 %v137_v37, %v136_v39   ;;  %v145_v1 = vadd.f32 %v144_v38, %v143_v40  }
  0x63   : > { %148 = vst [vmem:[%s147_s22] sm:$0xff] %v138_v0  ;;  %150 = vst [vmem:[%s149_s28] sm:$0xff] %v145_v1  ;;  %s629_s22 = smov %s151_s27 }
  0x64   :  { %s163_s10 = scalar_select %p83_p2, 1, 0 }
  0x66   :  { %165 = sst [smem:[#allocation10]] %s163_s10 }
  0x67   :  { %177 = dma.smem_to_hbm %s429_s11, 16, %s620_s6, [#allocation4]  }
  0x68   :  { %391 = dma.done.wait [#allocation4], 16  }
  0x69   :  { %392 = vsyncadd [#allocation4], 4294967280 }
  0x6a   :  { %185 = sfence }
  0x6b   :  { %186 = vsyncpa [#allocation3], 1 }
  0x6c   :  { %187 = vsyncpa [#allocation4], 1 }
  0x6d   :  { %188 = vsyncpa [#allocation5], 1 }
  0x6e   :  { %189 = vsyncpa [#allocation8], 1 }

</bundles_post_ra>
